<compile_context>
chip_gen: v7x
topology: tpu7x:2x2x1
jax: 0.10.0
libtpu: 0.0.40
codegen_flags: <defaults>
</compile_context>

<pallas_src>
import jax
import jax.numpy as jnp
from jax.experimental import pallas as pl
from jax.experimental.pallas import tpu as pltpu


def _round_up(x, m):
    return ((x + m - 1) // m) * m


def _autoencoder_kernel(x_ref, w1_ref, b1_ref, w2_ref, b2_ref, out_ref):
    # Encoder: h = relu(x @ W1 + b1). x cast to bf16 in-register for the MXU,
    # accumulation in f32, bias + ReLU in f32.
    x = x_ref[...].astype(w1_ref.dtype)
    h = jnp.dot(x, w1_ref[...], preferred_element_type=jnp.float32)
    h = jnp.maximum(h + b1_ref[...], 0.0)
    # Decoder: y = h @ W2 + b2 (h back to bf16 for the MXU).
    y = jnp.dot(h.astype(w2_ref.dtype), w2_ref[...],
                preferred_element_type=jnp.float32)
    out_ref[...] = (y + b2_ref[...]).astype(out_ref.dtype)


def prepare_params(w1, b1, w2, b2, compute_dtype=jnp.bfloat16):
    """One-time parameter prep (keep OUT of the per-step hot path).

    w1: (input_dim, hidden)  [already transposed vs. PyTorch: y = x @ W + b]
    b1: (hidden,)   w2: (hidden, input_dim)   b2: (input_dim,)

    Only the hidden dim is zero-padded (to a multiple of 128) so the
    intermediate h tile is lane-dense. Zero-padding is mathematically exact:
    padded columns get bias 0 -> relu(0) = 0 -> multiply zero W2 rows.
    Activations are NOT padded, so no extra HBM passes over x / out.
    """
    input_dim, hidden_dim = w1.shape
    hid_p = _round_up(hidden_dim, 128)
    w1p = jnp.zeros((input_dim, hid_p), compute_dtype)
    w1p = w1p.at[:, :hidden_dim].set(w1.astype(compute_dtype))
    b1p = jnp.zeros((1, hid_p), jnp.float32)
    b1p = b1p.at[0, :hidden_dim].set(b1.astype(jnp.float32))
    w2p = jnp.zeros((hid_p, input_dim), compute_dtype)
    w2p = w2p.at[:hidden_dim, :].set(w2.astype(compute_dtype))
    b2p = b2.astype(jnp.float32).reshape(1, input_dim)
    return w1p, b1p, w2p, b2p


def _vmem_budget_bytes():
    # Generation-aware VMEM budget: ~0.75x physical per-TC VMEM
    # (v5e/v6e: 128 MiB -> ~96 MiB usable; v7x: 64 MiB -> ~48 MiB), leaving
    # headroom for compiler-internal scratch.
    try:
        cap = int(pltpu.get_tpu_info().vmem_capacity_bytes)
    except Exception:
        cap = 64 << 20  # conservative fallback
    return (cap * 3) // 4


def autoencoder_forward(x, w1p, b1p, w2p, b2p, *, output_dtype=None,
                        max_tile_b=4096):
    """x: (B, input_dim). Params from prepare_params(). Returns (B, input_dim)."""
    B, input_dim = x.shape
    hid_p = w1p.shape[1]
    out_dtype = x.dtype if output_dtype is None else jnp.dtype(output_dtype)
    x_bytes = x.dtype.itemsize
    o_bytes = jnp.dtype(out_dtype).itemsize

    # --- batch-tile selection: largest multiple of 256 that fills the budget ---
    budget = _vmem_budget_bytes()
    headroom = 2 << 20
    # Per-row VMEM: double-buffered x + out tiles, plus in-kernel temporaries
    # (x bf16, y f32, h f32 + bf16).
    per_row = input_dim * (2 * x_bytes + 2 * o_bytes + 2 + 4) + hid_p * (4 + 2)
    # Fixed: resident bf16 weights (double-buffered) + f32 biases + headroom.
    fixed = 4 * input_dim * hid_p * 2 + 2 * (hid_p + input_dim) * 4 + headroom
    max_rows = max(8, (budget - fixed) // per_row)
    if max_rows >= 256:
        tile_b = min(max_tile_b, (max_rows // 256) * 256)
    else:
        tile_b = max(8, (max_rows // 8) * 8)

    # v7x megacore: ensure the 'parallel' batch axis has >= 2 steps when the
    # batch is large enough to split (weights are tiny; per-TC copy is free).
    if B >= 512:
        tile_b = min(tile_b, _round_up(-(-B // 2), 256))

    if tile_b >= B:
        tile_b = B                      # full-array block (always layout-legal)
        grid = (1,)
    else:
        grid = (pl.cdiv(B, tile_b),)    # last block may be partial; Pallas masks it

    vmem_limit = int(min(budget, max(fixed + tile_b * per_row, 32 << 20)))

    cost = pl.CostEstimate(
        flops=4 * B * input_dim * hid_p,                     # two matmuls
        transcendentals=0,
        bytes_accessed=(B * input_dim * (x_bytes + o_bytes)
                        + 2 * input_dim * hid_p * 2          # bf16 W1 + W2
                        + (hid_p + input_dim) * 4),          # f32 biases
    )

    return pl.pallas_call(
        _autoencoder_kernel,
        out_shape=jax.ShapeDtypeStruct((B, input_dim), out_dtype),
        grid_spec=pltpu.PrefetchScalarGridSpec(
            num_scalar_prefetch=0,
            grid=grid,
            in_specs=[
                pl.BlockSpec((tile_b, input_dim), lambda i: (i, 0)),  # x tile
                pl.BlockSpec((input_dim, hid_p), lambda i: (0, 0)),   # W1 (resident)
                pl.BlockSpec((1, hid_p), lambda i: (0, 0)),           # b1
                pl.BlockSpec((hid_p, input_dim), lambda i: (0, 0)),   # W2 (resident)
                pl.BlockSpec((1, input_dim), lambda i: (0, 0)),       # b2
            ],
            out_specs=pl.BlockSpec((tile_b, input_dim), lambda i: (i, 0)),
        ),
        compiler_params=pltpu.CompilerParams(
            dimension_semantics=("parallel",),
            vmem_limit_bytes=vmem_limit,
        ),
        cost_estimate=cost,
    )(x, w1p, b1p, w2p, b2p)


def reference_forward(x, w1, b1, w2, b2):
    h = jnp.maximum(x @ w1 + b1, 0.0)
    return h @ w2 + b2


if __name__ == "__main__":
    # Shapes consistent with SimpleAutoencoder(input_dim, hidden_dim).
    input_dim = 64
    hidden_dim = 32

    key = jax.random.PRNGKey(0)
    kx, kw1, kb1, kw2, kb2, kx2 = jax.random.split(key, 6)

    # Deterministic parameter init (PyTorch-like uniform bounds, synthetic).
    bound1 = 1.0 / (input_dim ** 0.5)
    w1 = jax.random.uniform(kw1, (input_dim, hidden_dim), jnp.float32, -bound1, bound1)
    b1 = jax.random.uniform(kb1, (hidden_dim,), jnp.float32, -bound1, bound1)
    bound2 = 1.0 / (hidden_dim ** 0.5)
    w2 = jax.random.uniform(kw2, (hidden_dim, input_dim), jnp.float32, -bound2, bound2)
    b2 = jax.random.uniform(kb2, (input_dim,), jnp.float32, -bound2, bound2)

    # One-time (out of hot path) weight padding + bf16 cast.
    w1p, b1p, w2p, b2p = prepare_params(w1, b1, w2, b2)

    # Case 1: small batch -> single full-array block, grid=(1,).
    x_small = jax.random.normal(kx, (8, input_dim), dtype=jnp.float32)
    out_small = jax.block_until_ready(
        autoencoder_forward(x_small, w1p, b1p, w2p, b2p))
    ref_small = reference_forward(x_small, w1, b1, w2, b2)
    assert out_small.shape == (8, input_dim)
    # bf16 operands with f32 accumulation -> loosened tolerance vs f32 reference.
    assert jnp.allclose(out_small, ref_small, atol=5e-2, rtol=5e-2), \
        "small-batch mismatch vs reference"

    # Case 2: batch not divisible by the tile -> multi-step 'parallel' grid with
    # a masked partial last block (also exercises the >=2-step v7x path).
    x_big = jax.random.normal(kx2, (777, input_dim), dtype=jnp.float32)
    out_big = jax.block_until_ready(
        autoencoder_forward(x_big, w1p, b1p, w2p, b2p))
    ref_big = reference_forward(x_big, w1, b1, w2, b2)
    assert out_big.shape == (777, input_dim)
    assert jnp.allclose(out_big, ref_big, atol=5e-2, rtol=5e-2), \
        "tiled-batch mismatch vs reference"

    print("KERNEL_OK")
</pallas_src>

<mosaic_0001>
module attributes {stable_mosaic.version = 11 : i64} {
  func.func @_autoencoder_kernel(%arg0: i32, %arg1: memref<8x64xf32, #tpu.memory_space<vmem>>, %arg2: memref<64x128xbf16, #tpu.memory_space<vmem>>, %arg3: memref<1x128xf32, #tpu.memory_space<vmem>>, %arg4: memref<128x64xbf16, #tpu.memory_space<vmem>>, %arg5: memref<1x64xf32, #tpu.memory_space<vmem>>, %arg6: memref<8x64xf32, #tpu.memory_space<vmem>>) attributes {dimension_semantics = [#tpu.dimension_semantics<parallel>], iteration_bounds = array<i64: 1>, scalar_prefetch = 0 : i64, scratch_operands = 0 : i64, tpu.core_type = #tpu.core_type<tc>, window_params = [{transform_indices = @transform_0, window_bounds = array<i64: 8, 64>}, {pipeline_mode = #tpu.pipeline_mode<synchronous>, transform_indices = @transform_1, window_bounds = array<i64: 64, 128>}, {pipeline_mode = #tpu.pipeline_mode<synchronous>, transform_indices = @transform_2, window_bounds = array<i64: 1, 128>}, {pipeline_mode = #tpu.pipeline_mode<synchronous>, transform_indices = @transform_3, window_bounds = array<i64: 128, 64>}, {pipeline_mode = #tpu.pipeline_mode<synchronous>, transform_indices = @transform_4, window_bounds = array<i64: 1, 64>}, {transform_indices = @transform_5, window_bounds = array<i64: 8, 64>}]} {
    %c0 = arith.constant 0 : index
    %c0_0 = arith.constant 0 : index
    %0 = vector.load %arg1[%c0, %c0_0] : memref<8x64xf32, #tpu.memory_space<vmem>>, vector<8x64xf32>
    %1 = arith.truncf %0 : vector<8x64xf32> to vector<8x64xbf16>
    %c0_1 = arith.constant 0 : index
    %c0_2 = arith.constant 0 : index
    %2 = vector.load %arg2[%c0_1, %c0_2] : memref<64x128xbf16, #tpu.memory_space<vmem>>, vector<64x128xbf16>
    %cst = arith.constant dense<0.000000e+00> : vector<8x128xf32>
    %3 = tpu.matmul %1, %2, %cst {dimension_numbers = #tpu.dot_dimension_numbers<[1], [0], [0], [1], [0, 0, 1, 1], [], []>} : vector<8x64xbf16>, vector<64x128xbf16>, vector<8x128xf32> -> vector<8x128xf32>
    %c0_3 = arith.constant 0 : index
    %c0_4 = arith.constant 0 : index
    %4 = vector.load %arg3[%c0_3, %c0_4] : memref<1x128xf32, #tpu.memory_space<vmem>>, vector<1x128xf32>
    %5 = vector.broadcast %4 : vector<1x128xf32> to vector<8x128xf32>
    %6 = arith.addf %3, %5 : vector<8x128xf32>
    %cst_5 = arith.constant 0.000000e+00 : f32
    %7 = vector.broadcast %cst_5 : f32 to vector<8x128xf32>
    %8 = arith.maximumf %6, %7 : vector<8x128xf32>
    %9 = arith.truncf %8 : vector<8x128xf32> to vector<8x128xbf16>
    %c0_6 = arith.constant 0 : index
    %c0_7 = arith.constant 0 : index
    %10 = vector.load %arg4[%c0_6, %c0_7] : memref<128x64xbf16, #tpu.memory_space<vmem>>, vector<128x64xbf16>
    %cst_8 = arith.constant dense<0.000000e+00> : vector<8x64xf32>
    %11 = tpu.matmul %9, %10, %cst_8 {dimension_numbers = #tpu.dot_dimension_numbers<[1], [0], [0], [1], [0, 0, 1, 1], [], []>} : vector<8x128xbf16>, vector<128x64xbf16>, vector<8x64xf32> -> vector<8x64xf32>
    %c0_9 = arith.constant 0 : index
    %c0_10 = arith.constant 0 : index
    %12 = vector.load %arg5[%c0_9, %c0_10] : memref<1x64xf32, #tpu.memory_space<vmem>>, vector<1x64xf32>
    %13 = vector.broadcast %12 : vector<1x64xf32> to vector<8x64xf32>
    %14 = arith.addf %11, %13 : vector<8x64xf32>
    %c0_11 = arith.constant 0 : index
    %c0_12 = arith.constant 0 : index
    %15 = vector.load %arg6[%c0_11, %c0_12] : memref<8x64xf32, #tpu.memory_space<vmem>>, vector<8x64xf32>
    tpu.vector_store %arg6[%c0_11, %c0_12], %14 {strides = array<i32>} : memref<8x64xf32, #tpu.memory_space<vmem>>, vector<8x64xf32>,
    return
  }
  func.func @transform_0(%arg0: i32) -> (i32, i32) {
    %c0_i32 = arith.constant 0 : i32
    %c0_i32_0 = arith.constant 0 : i32
    return %arg0, %c0_i32 : i32, i32
  }
  func.func @transform_1(%arg0: i32) -> (i32, i32) {
    %c0_i32 = arith.constant 0 : i32
    %c0_i32_0 = arith.constant 0 : i32
    %c0_i32_1 = arith.constant 0 : i32
    return %c0_i32, %c0_i32_0 : i32, i32
  }
  func.func @transform_2(%arg0: i32) -> (i32, i32) {
    %c0_i32 = arith.constant 0 : i32
    %c0_i32_0 = arith.constant 0 : i32
    %c0_i32_1 = arith.constant 0 : i32
    return %c0_i32, %c0_i32_0 : i32, i32
  }
  func.func @transform_3(%arg0: i32) -> (i32, i32) {
    %c0_i32 = arith.constant 0 : i32
    %c0_i32_0 = arith.constant 0 : i32
    %c0_i32_1 = arith.constant 0 : i32
    return %c0_i32, %c0_i32_0 : i32, i32
  }
  func.func @transform_4(%arg0: i32) -> (i32, i32) {
    %c0_i32 = arith.constant 0 : i32
    %c0_i32_0 = arith.constant 0 : i32
    %c0_i32_1 = arith.constant 0 : i32
    return %c0_i32, %c0_i32_0 : i32, i32
  }
  func.func @transform_5(%arg0: i32) -> (i32, i32) {
    %c0_i32 = arith.constant 0 : i32
    %c0_i32_0 = arith.constant 0 : i32
    return %arg0, %c0_i32 : i32, i32
  }
}

</mosaic_0001>

<bundles_post_ra>
// kernel: tpu_custom_call.1
= control target key start
LH: loop header
LB: loop body
LE: loop exit
PB: predicated region body
PF: predicated region fallthrough
CT: control target
= control target key end

     0   :  { %v335_v1 = vmov 0.0   ;;  %vm336_vm0 = vmmov 0   ;;  %s427_s0 = inlined_call_operand.vmem [shape: f32[8,64], index: 0, kind: input, shape index: {}]   ;;  %s428_s1 = inlined_call_operand.vmem [shape: bf16[64,128], index: 1, kind: input, shape index: {}]   ;;  %s429_s2 = inlined_call_operand.vmem [shape: f32[1,128], index: 2, kind: input, shape index: {}]   ;;  %s430_s3 = inlined_call_operand.vmem [shape: bf16[128,64], index: 3, kind: input, shape index: {}]   ;;  %s431_s4 = inlined_call_operand.vmem [shape: f32[1,64], index: 4, kind: input, shape index: {}]   ;;  %s432_s5 = inlined_call_operand.hbm [shape: f32[8,64], index: 5, kind: output, shape index: {}]  }
   0x1   :  { %v299_v0 = vld [vmem:[%s428_s1] sm:$0xff]   ;;  %264 = vmatprep.subr.bf16.mxu0 %v335_v1  ;;  %276 = vmatprep.subr.bf16.mxu1 %v335_v1  ;;  %v300_v2 = vld [vmem:[%s428_s1 + $0x8] sm:$0xff]   ;;  %v301_v4 = vld [vmem:[%s428_s1 + $0x10] sm:$0xff]  }
   0x2   :  { %265 = vmatpush3.bf16.msra.mxu0 %v299_v0  ;;  %272 = vmatprep.mubr.msk.bf16.mxu0 %vm336_vm0, %v335_v1  ;;  %v303_v3 = vld [vmem:[%s430_s3] sm:$0xff]   ;;  %v304_v5 = vld [vmem:[%s430_s3 + $0x8] sm:$0xff]   ;;  %v302_v6 = vld [vmem:[%s428_s1 + $0x18] sm:$0xff]  }
   0x3   :  { %266 = vmatprep.subr.bf16.mxu0 %v335_v1  ;;  %292 = vmatprep.mubr.msk.bf16.mxu1 %vm336_vm0, %v335_v1  ;;  %v22_v7 = vld [vmem:[%s427_s0] sm:$0xff]  ;;  %v305_v8 = vld [vmem:[%s430_s3 + $0x10] sm:$0xff]  }
   0x4   :  { %277 = vmatpush3.bf16.msra.mxu1 %v303_v3 }
   0x5   :  { %278 = vmatprep.subr.bf16.mxu1 %v335_v1 }
   0x6   :  { %267 = vmatpush3.bf16.msra.mxu0 %v300_v2 }
   0x7   :  { %268 = vmatprep.subr.bf16.mxu0 %v335_v1 }
   0x8   :  { %279 = vmatpush3.bf16.msra.mxu1 %v304_v5 }
   0x9   :  { %280 = vmatprep.subr.bf16.mxu1 %v335_v1 }
   0xa   :  { %269 = vmatpush3.bf16.msra.mxu0 %v301_v4 }
   0xb   :  { %270 = vmatprep.subr.bf16.mxu0 %v335_v1 }
   0xc   :  { %10 = vsyncpa [#allocation3], 0  ;;  %v23_v9 = vpack.c.bf16 %v22_v7, %v22_v7  ;;  %vm63_vm1 = vcmask 523264   ;;  %281 = vmatpush3.bf16.msra.mxu1 %v305_v8  ;;  %v306_v10 = vld [vmem:[%s430_s3 + $0x18] sm:$0xff]   ;;  %v307_v11 = vld [vmem:[%s430_s3 + $0x20] sm:$0xff]   ;;  %s337_s21 = smov [#allocation2]  }
   0xd   :  { %282 = vmatprep.subr.bf16.mxu1 %v335_v1  ;;  %v308_v12 = vld [vmem:[%s430_s3 + $0x28] sm:$0xff]   ;;  %v309_v13 = vld [vmem:[%s430_s3 + $0x30] sm:$0xff]   ;;  %v310_v14 = vld [vmem:[%s430_s3 + $0x38] sm:$0xff]   ;;  %s227_s22 = sshll.u32 %s337_s21, 4  ;;  %s228_s22 = int_to_ptr.vmem [resolvable:$true] %s227_s22 }
   0xe   :  { %271 = vmatpush3.bf16.msra.mxu0 %v302_v6  ;;  %v235_v15 = vld [vmem:[%s429_s2] ss:$0 sm:$0xff]  ;;  %s311_s2 = scalar_lea.vmem %s228_s22, 128  ;;  %p316_p1 = scmp.lt.s32.totalorder %s228_s22, %s228_s22 }
   0xf   :  { %v241_v23 = vld [vmem:[%s431_s4] ss:$0 sm:$0xff]  ;;  %p312_p0 = scmp.ne.s32.totalorder %s228_s22, %s311_s2  ;;  %p317_p2 = scmp.lt.s32.totalorder %s311_s2, %s311_s2 }
  0x10   :  { %283 = vmatpush3.bf16.msra.mxu1 %v306_v10 }
  0x11   :  { %273 = vmatmul.mubr.msk.bf16.vlgmr.msra.gmra.mrb[0].mxu0 %vm63_vm1, %v23_v9  ;;  %284 = vmatprep.subr.bf16.mxu1 %v335_v1  ;;  %p318_p3 = por %p317_p2, %p316_p1 }
  0x13   :  { %p319_p4 = pnand %p318_p3, %p312_p0 }
  0x14   :  { %285 = vmatpush3.bf16.msra.mxu1 %v307_v11 }
  0x15   :  { %286 = vmatprep.subr.bf16.mxu1 %v335_v1 }
  0x18   :  { %287 = vmatpush3.bf16.msra.mxu1 %v308_v12 }
  0x19   :  { %288 = vmatprep.subr.bf16.mxu1 %v335_v1 }
  0x1c   :  { %289 = vmatpush3.bf16.msra.mxu1 %v309_v13 }
  0x1d   :  { %290 = vmatprep.subr.bf16.mxu1 %v335_v1 }
  0x20   :  { %291 = vmatpush3.bf16.msra.mxu1 %v310_v14 }
  0xe4   :  { %v101_v16 = vpop.f32.mrb[0].mxu0 }
  0xe5   :  { %v102_v17 = vadd.f32 %v235_v15, %v101_v16  ;;  %v274_v18 = vpop.f32.mrb[1].mxu0 }
  0xe6   :  { %v104_v19 = vpop.f32.mrb[2].mxu0 }
  0xe7   :  { %v107_v20 = vmax.f32 %v102_v17, 0.0  ;;  %v275_v21 = vpop.f32.mrb[3].mxu0 }
  0xe9   :  { %v108_v22 = vpack.c.bf16 %v107_v20, %v107_v20 }
  0xeb   :  { %293 = vmatmul.mubr.bf16.vlgmr.msra.gmra.mrb[0].mxu1 %v108_v22 }
 0x1be   :  { %v214_v24 = vpop.f32.mrb[0].mxu1 }
 0x1bf   :  { %v215_v25 = vadd.f32 %v241_v23, %v214_v24  ;;  %v294_v26 = vpop.f32.mrb[1].mxu1 }
 0x1c0   :  { %v217_v27 = vpop.f32.mrb[2].mxu1 }
 0x1c1   :  { %220 = vst.msk [vmem:[#allocation2] sm:$0xff] %vm63_vm1, %v215_v25  ;;  %v295_v28 = vpop.f32.mrb[3].mxu1 }
 0x1c2   :  { %322 = shalt.err (!%p319_p4)
}
 0x1c3   :  { %s323_s4 = scalar_lea.hbm %s432_s5, 128 }
 0x1c4   :  { %p324_p5 = scmp.ne.s32.totalorder %s432_s5, %s323_s4  ;;  %p327_p6 = scmp.lt.u32.totalorder %s323_s4, %s432_s5 }
 0x1c6   :  { %p329_p7 = pnand %p327_p6, %p324_p5 }
 0x1c8   :  { %332 = shalt.err (!%p329_p7)
}
 0x1c9   :  { %230 = dma.vmem_to_hbm [thread:$0]  %s228_s22, 128, %s432_s5, [#allocation3]  }
 0x1ca   :  { %333 = dma.done.wait [#allocation3], 128  }
 0x1cb   :  { %334 = vsyncadd [#allocation3], 4294967168 }
 0x1cc   :  { %234 = vsyncpa [#allocation3], 1 }

</bundles_post_ra>
